<compile_context>
chip_gen: v6e
topology: v6e:2x2x1
jax: 0.10.0
libtpu: 0.0.40
codegen_flags: <defaults>
</compile_context>

<pallas_src>
import math

import jax
import jax.numpy as jnp
from jax.experimental import pallas as pl
from jax.experimental.pallas import tpu as pltpu

_LANE = 128
_COLS = 1024          # lane-dense last dim (large multiple of 128)
_MAX_TILE_ROWS = 512  # 512 x 1024 x 4 B = 2 MiB per block; multiple of 8/16/32


def _copy_kernel(x_ref, o_ref):
    # Whole-tile VMEM copy of the current (tile_rows, cols) block.
    o_ref[...] = x_ref[...]


def toy_meta2_forward(tensor_a: jax.Array, *, elide_copy: bool = False,
                      alias_input: bool = False) -> jax.Array:
    """Identity forward pass of ToyMeta2.

    elide_copy:  return the input directly (zero HBM traffic).
    alias_input: pass input_output_aliases={0: 0} to pallas_call.  Only
                 beneficial when the caller donates the input buffer
                 (jax.jit(..., donate_argnums=...)); otherwise XLA inserts a
                 defensive copy, which is why this is off by default.
    """
    if elide_copy:
        return tensor_a

    orig_shape = tensor_a.shape
    orig_dtype = tensor_a.dtype
    total = math.prod(orig_shape)
    if total == 0:
        return tensor_a

    itemsize = jnp.dtype(orig_dtype).itemsize
    flat = tensor_a.reshape(-1)

    # Bitcast sub-32-bit dtypes to uint32 when the byte count allows, so the
    # copy always moves full 32-bit lanes.
    work = flat
    bitcast = itemsize < 4 and (total * itemsize) % 4 == 0
    if bitcast:
        pack = 4 // itemsize
        work = jax.lax.bitcast_convert_type(
            flat.reshape(total // pack, pack), jnp.uint32
        )
    n = work.shape[0]
    work_itemsize = jnp.dtype(work.dtype).itemsize

    # Lane-dense 2D slab: cols is a large multiple of 128; pad by < cols elems
    # if needed so the reshape is exact.
    cols = _COLS if n >= _COLS else _LANE
    rows = pl.cdiv(n, cols)
    padded = rows * cols
    if padded != n:
        work = jnp.pad(work, (0, padded - n))
    x2d = work.reshape(rows, cols)

    # Row tiling: a single full-array block if it is small, otherwise 512-row
    # (2 MiB) blocks so the pipeline double-buffers reads against writes.  The
    # last block may be partial; Pallas masks its out-of-bounds stores.
    tile_rows = rows if rows <= _MAX_TILE_ROWS else _MAX_TILE_ROWS
    grid = (pl.cdiv(rows, tile_rows),)

    out2d = pl.pallas_call(
        _copy_kernel,
        out_shape=jax.ShapeDtypeStruct((rows, cols), x2d.dtype),
        grid=grid,
        in_specs=[pl.BlockSpec((tile_rows, cols), lambda i: (i, 0))],
        out_specs=pl.BlockSpec((tile_rows, cols), lambda i: (i, 0)),
        compiler_params=pltpu.CompilerParams(
            dimension_semantics=("parallel",),
        ),
        cost_estimate=pl.CostEstimate(
            flops=0,
            transcendentals=0,
            bytes_accessed=2 * padded * work_itemsize,
        ),
        input_output_aliases=({0: 0} if alias_input else {}),
    )(x2d)

    out_flat = out2d.reshape(-1)
    if padded != n:
        out_flat = out_flat[:n]
    if bitcast:
        out_flat = jax.lax.bitcast_convert_type(out_flat, orig_dtype).reshape(-1)
    return out_flat.reshape(orig_shape)


if __name__ == "__main__":
    key = jax.random.PRNGKey(0)
    k0, k1 = jax.random.split(key)

    # Small NCHW-style input, consistent with a conv-style tensor.
    x = jax.random.normal(k0, (2, 4, 16, 16), dtype=jnp.float32)
    y = jax.block_until_ready(toy_meta2_forward(x))
    assert y.shape == x.shape and y.dtype == x.dtype
    assert jnp.array_equal(y, x)

    # Non-multiple-of-128 size exercises the padded lane-dense path.
    x_odd = jax.random.normal(k1, (3, 5, 7), dtype=jnp.float32)
    y_odd = jax.block_until_ready(toy_meta2_forward(x_odd))
    assert y_odd.shape == x_odd.shape and jnp.array_equal(y_odd, x_odd)

    # bf16 exercises the bitcast-to-uint32 copy path.
    x_bf16 = x.astype(jnp.bfloat16)
    y_bf16 = jax.block_until_ready(toy_meta2_forward(x_bf16))
    assert y_bf16.dtype == jnp.bfloat16 and jnp.array_equal(y_bf16, x_bf16)

    # Zero-cost elided identity (perf-review option #1).
    assert toy_meta2_forward(x, elide_copy=True) is x

    print("KERNEL_OK")
</pallas_src>

<mosaic_0001>
module attributes {stable_mosaic.version = 11 : i64} {
  func.func @_copy_kernel(%arg0: i32, %arg1: memref<2x1024xf32, #tpu.memory_space<vmem>>, %arg2: memref<2x1024xf32, #tpu.memory_space<vmem>>) attributes {dimension_semantics = [#tpu.dimension_semantics<parallel>], iteration_bounds = array<i64: 1>, scalar_prefetch = 0 : i64, scratch_operands = 0 : i64, tpu.core_type = #tpu.core_type<tc>, window_params = [{transform_indices = @transform_0, window_bounds = array<i64: 2, 1024>}, {transform_indices = @transform_1, window_bounds = array<i64: 2, 1024>}]} {
    %c0 = arith.constant 0 : index
    %c0_0 = arith.constant 0 : index
    %0 = vector.load %arg1[%c0, %c0_0] : memref<2x1024xf32, #tpu.memory_space<vmem>>, vector<2x1024xf32>
    %c0_1 = arith.constant 0 : index
    %c0_2 = arith.constant 0 : index
    %1 = vector.load %arg2[%c0_1, %c0_2] : memref<2x1024xf32, #tpu.memory_space<vmem>>, vector<2x1024xf32>
    tpu.vector_store %arg2[%c0_1, %c0_2], %0 {strides = array<i32>} : memref<2x1024xf32, #tpu.memory_space<vmem>>, vector<2x1024xf32>,
    return
  }
  func.func @transform_0(%arg0: i32) -> (i32, i32) {
    %c0_i32 = arith.constant 0 : i32
    %c0_i32_0 = arith.constant 0 : i32
    return %arg0, %c0_i32 : i32, i32
  }
  func.func @transform_1(%arg0: i32) -> (i32, i32) {
    %c0_i32 = arith.constant 0 : i32
    %c0_i32_0 = arith.constant 0 : i32
    return %arg0, %c0_i32 : i32, i32
  }
}

</mosaic_0001>

<bundles_post_ra>
// kernel: tpu_custom_call.1
= control target key start
LH: loop header
LB: loop body
LE: loop exit
PB: predicated region body
PF: predicated region fallthrough
CT: control target
= control target key end

     0   :  { %6 = vsyncpa [#allocation3], 0  ;;  %s104_s0 = inlined_call_operand.hbm [shape: f32[2,1024], index: 0, kind: input, shape index: {}]   ;;  %s105_s1 = inlined_call_operand.hbm [shape: f32[2,1024], index: 1, kind: output, shape index: {}]  }
   0x1   :  { %7 = vsyncpa [#allocation4], 0  ;;  %s86_s6 = smov [#allocation2]  }
   0x2   :  { %s14_s7 = sshll.u32 %s86_s6, 4  ;;  %s15_s7 = int_to_ptr.vmem [resolvable:$true] %s14_s7 }
   0x3   :  { %s50_s8 = scalar_lea.vmem %s15_s7, 256  ;;  %p55_p1 = scmp.lt.s32.totalorder %s15_s7, %s15_s7 }
   0x4   :  { %p51_p0 = scmp.ne.s32.totalorder %s15_s7, %s50_s8  ;;  %p56_p2 = scmp.lt.s32.totalorder %s50_s8, %s50_s8 }
   0x6   :  { %p57_p3 = por %p56_p2, %p55_p1 }
   0x8   :  { %p58_p4 = pnand %p57_p3, %p51_p0 }
   0xa   :  { %61 = shalt.err (!%p58_p4)
}
   0xb   :  { %17 = dma.hbm_to_vmem [thread:$0]  %s104_s0, 256, %s15_s7, [#allocation3]  }
   0xc   :  { %82 = dma.done.wait [#allocation3], 256  }
   0xd   :  { %83 = vsyncadd [#allocation3], 4294967040  ;;  %s87_s11 = smov [#allocation5]   ;;  %v21_v0 = vld [vmem:[#allocation2] sm:$0xff]  ;;  %v22_v1 = vld [vmem:[#allocation2 + $0x8] sm:$0xff] }
   0xe   :  { %s31_s12 = sshll.u32 %s87_s11, 4  ;;  %23 = vst [vmem:[#allocation5] sm:$0xff] %v21_v0  ;;  %24 = vst [vmem:[#allocation5 + $0x8] sm:$0xff] %v22_v1  ;;  %s32_s12 = int_to_ptr.vmem [resolvable:$true] %s31_s12 }
   0xf   :  { %s62_s13 = scalar_lea.vmem %s32_s12, 256  ;;  %p67_p6 = scmp.lt.s32.totalorder %s32_s12, %s32_s12 }
  0x10   :  { %p63_p5 = scmp.ne.s32.totalorder %s32_s12, %s62_s13  ;;  %p68_p7 = scmp.lt.s32.totalorder %s62_s13, %s62_s13 }
  0x12   :  { %p69_p8 = por %p68_p7, %p67_p6 }
  0x14   :  { %p70_p9 = pnand %p69_p8, %p63_p5 }
  0x16   :  { %73 = shalt.err (!%p70_p9)
}
  0x17   :  { %34 = dma.vmem_to_hbm [thread:$0]  %s32_s12, 256, %s105_s1, [#allocation4]  }
  0x18   :  { %84 = dma.done.wait [#allocation4], 256  }
  0x19   :  { %85 = vsyncadd [#allocation4], 4294967040 }
  0x1a   :  { %38 = vsyncpa [#allocation3], 1 }
  0x1b   :  { %39 = vsyncpa [#allocation4], 1 }

</bundles_post_ra>
